<compile_context>
chip_gen: v6e
topology: v6e:2x2x1
jax: 0.10.0
libtpu: 0.0.40
codegen_flags: <defaults>
</compile_context>

<pallas_src>
import math

import jax
import jax.numpy as jnp
from jax.experimental import pallas as pl
from jax.experimental.pallas import tpu as pltpu  # noqa: F401  (no TPU-specific compiler params needed)

B, S, D_MODEL, N_HEAD, HIDDEN = 2, 8, 32, 4, 64
D_HEAD = D_MODEL // N_HEAD
G = B * N_HEAD                       # (head, batch) groups; g = h * B + b
EPS = 1e-12                          # faithful to the PyTorch source

# ---- packed parameter slab layout (SLAB_ROWS rows x 128 lanes, f32) --------
ROWS_W1 = 0                          # w1_t: (D_MODEL, HIDDEN)  rows [0, 32)
ROWS_W2 = ROWS_W1 + D_MODEL          # w2_t: (HIDDEN, D_MODEL)  rows [32, 96)
ROW_BC  = ROWS_W2 + HIDDEN           # 96
ROW_G1  = ROW_BC + 1                 # 97
ROW_BE1 = ROW_G1 + 1                 # 98
ROW_B1  = ROW_BE1 + 1                # 99  (width HIDDEN)
ROW_B2  = ROW_B1 + 1                 # 100
ROW_G2  = ROW_B2 + 1                 # 101
ROW_BE2 = ROW_G2 + 1                 # 102
SLAB_ROWS = 104                      # padded to a multiple of 8 sublanes
SLAB_COLS = 128                      # one full lane width


def _layernorm(x, gamma, beta):
    # PyTorch LayerNorm in the source: mean / var(unbiased=False) on last dim.
    # rsqrt lowers to the EUP (its own VLIW slot).
    mean = jnp.mean(x, axis=-1, keepdims=True)
    var = jnp.mean((x - mean) ** 2, axis=-1, keepdims=True)
    return gamma * ((x - mean) * jax.lax.rsqrt(var + EPS)) + beta


def encoder_kernel(x2_ref, xg_ref, wqg_ref, bqg_ref, wcg_ref, p_ref, y_ref):
    x2 = x2_ref[...]                  # (B*S, D_MODEL)  token-major activations
    xg = xg_ref[...]                  # (G, S, D_MODEL) x replicated per group
    wqg = wqg_ref[...]                # (G, D_MODEL, D_HEAD)  W_q column blocks
    wcg = wcg_ref[...]                # (G, D_HEAD, D_MODEL)  W_concat row blocks

    # --- MultiHead_attention: shared projection computed ONCE (q = k = v) ---
    qh = jnp.einsum("gsk,gkd->gsd", xg, wqg,
                    preferred_element_type=jnp.float32) + bqg_ref[...]  # (G,S,Dh)

    # Scaled dot-product attention, batched over all (head, batch) groups.
    s = jnp.einsum("gqd,gkd->gqk", qh, qh,
                   preferred_element_type=jnp.float32) * (1.0 / math.sqrt(D_HEAD))
    s = s - jnp.max(s, axis=-1, keepdims=True)            # stable softmax
    e = jnp.exp(s)
    p = e * pl.reciprocal(jnp.sum(e, axis=-1, keepdims=True), approx=True)
    o = jnp.einsum("gqk,gkd->gqd", p, qh,
                   preferred_element_type=jnp.float32)                  # (G,S,Dh)

    # W_concat per head block, summed over heads (== concat(heads) @ W_concat).
    contrib = jnp.einsum("gsd,gdm->gsm", o, wcg,
                         preferred_element_type=jnp.float32)            # (G,S,D)
    att3 = contrib[0:B]
    for h in range(1, N_HEAD):                            # static: 3 vector adds
        att3 = att3 + contrib[h * B:(h + 1) * B]
    att = att3.reshape(B * S, D_MODEL) + p_ref[ROW_BC:ROW_BC + 1, 0:D_MODEL]

    # dropout_layer_1 is identity at inference.
    att = _layernorm(att + x2,
                     p_ref[ROW_G1:ROW_G1 + 1, 0:D_MODEL],
                     p_ref[ROW_BE1:ROW_BE1 + 1, 0:D_MODEL])

    # --- PositionwiseFeedForward --------------------------------------------
    w1 = p_ref[ROWS_W1:ROWS_W1 + D_MODEL, 0:HIDDEN]
    w2 = p_ref[ROWS_W2:ROWS_W2 + HIDDEN, 0:D_MODEL]
    b1 = p_ref[ROW_B1:ROW_B1 + 1, 0:HIDDEN]
    b2 = p_ref[ROW_B2:ROW_B2 + 1, 0:D_MODEL]
    h1 = jnp.maximum(jnp.dot(att, w1, preferred_element_type=jnp.float32) + b1, 0.0)
    ffn = jnp.dot(h1, w2, preferred_element_type=jnp.float32) + b2

    # dropout_layer_2 is identity at inference.
    y = _layernorm(ffn + att,
                   p_ref[ROW_G2:ROW_G2 + 1, 0:D_MODEL],
                   p_ref[ROW_BE2:ROW_BE2 + 1, 0:D_MODEL])
    y_ref[...] = y


def _pack_slab(p):
    """Pack all 2-D / vector parameters into one (SLAB_ROWS, 128) f32 slab."""
    slab = jnp.zeros((SLAB_ROWS, SLAB_COLS), jnp.float32)
    slab = slab.at[ROWS_W1:ROWS_W1 + D_MODEL, 0:HIDDEN].set(p["w1_t"])
    slab = slab.at[ROWS_W2:ROWS_W2 + HIDDEN, 0:D_MODEL].set(p["w2_t"])
    slab = slab.at[ROW_BC, 0:D_MODEL].set(p["bc"][0])
    slab = slab.at[ROW_G1, 0:D_MODEL].set(p["g1"][0])
    slab = slab.at[ROW_BE1, 0:D_MODEL].set(p["be1"][0])
    slab = slab.at[ROW_B1, 0:HIDDEN].set(p["b1"][0])
    slab = slab.at[ROW_B2, 0:D_MODEL].set(p["b2"][0])
    slab = slab.at[ROW_G2, 0:D_MODEL].set(p["g2"][0])
    slab = slab.at[ROW_BE2, 0:D_MODEL].set(p["be2"][0])
    return slab


def _prep_group_operands(x, p):
    """Layout plumbing done OUTSIDE the kernel (pure reshape / tile / repeat)."""
    x2d = x.reshape(B * S, D_MODEL)
    # x replicated once per head; group index g = h * B + b.
    xg = jnp.tile(x, (N_HEAD, 1, 1))                                    # (G,S,D)
    # Per-head column blocks of W_q (and its bias), repeated per batch element.
    wq_heads = p["wq_t"].reshape(D_MODEL, N_HEAD, D_HEAD).transpose(1, 0, 2)
    wqg = jnp.repeat(wq_heads, B, axis=0)                               # (G,D,Dh)
    bqg = jnp.broadcast_to(
        jnp.repeat(p["bq"].reshape(N_HEAD, 1, D_HEAD), B, axis=0),
        (G, S, D_HEAD))                                                 # (G,S,Dh)
    # Per-head row blocks of W_concat, repeated per batch element.
    wcg = jnp.repeat(p["wc_t"].reshape(N_HEAD, D_HEAD, D_MODEL), B, axis=0)
    return x2d, xg, wqg, bqg, wcg


def encoder_layer_pallas(x, params):
    """Returns the Pallas-computed encoder value y of shape (B, S, D_MODEL)."""
    x2d, xg, wqg, bqg, wcg = _prep_group_operands(x, params)
    slab = _pack_slab(params)
    # Single fused invocation: no grid; every operand is a whole-array VMEM
    # block (total footprint < 100 KB), so each input is DMA'd exactly once.
    y2d = pl.pallas_call(
        encoder_kernel,
        out_shape=jax.ShapeDtypeStruct((B * S, D_MODEL), jnp.float32),
    )(x2d, xg, wqg, bqg, wcg, slab)
    return y2d.reshape(B, S, D_MODEL)


def encoder_layer_forward(x, params):
    """Matches EncoderLayer.forward semantics exactly.

    The reference forward returns the ORIGINAL input x (bug in source), so the
    module output is x; the internally computed value y is still produced by
    the Pallas kernel.
    """
    y = encoder_layer_pallas(x, params)
    return x, y


# ----------------------------- pure-JAX reference ---------------------------
def _layernorm_ref(x, gamma, beta):
    mean = jnp.mean(x, axis=-1, keepdims=True)
    var = jnp.mean((x - mean) ** 2, axis=-1, keepdims=True)
    return gamma * ((x - mean) / jnp.sqrt(var + EPS)) + beta


def _reference_jax(x, p):
    q = x @ p["wq_t"] + p["bq"]          # W_q used for q, k AND v (source bug)

    def split(t):
        return t.reshape(B, S, N_HEAD, D_HEAD).transpose(0, 2, 1, 3)

    qh = split(q)
    s = jnp.einsum("bhqd,bhkd->bhqk", qh, qh) / math.sqrt(D_HEAD)
    a = jax.nn.softmax(s, axis=-1)
    o = jnp.einsum("bhqk,bhkd->bhqd", a, qh)
    o = o.transpose(0, 2, 1, 3).reshape(B, S, D_MODEL)
    att = o @ p["wc_t"] + p["bc"]
    att = _layernorm_ref(att + x, p["g1"], p["be1"])
    h1 = jnp.maximum(att @ p["w1_t"] + p["b1"], 0.0)
    ffn = h1 @ p["w2_t"] + p["b2"]
    return _layernorm_ref(ffn + att, p["g2"], p["be2"])


def _init_params(key):
    ks = jax.random.split(key, 8)
    scale = 0.05
    return {
        "wq_t": scale * jax.random.normal(ks[0], (D_MODEL, D_MODEL), jnp.float32),
        "bq":   scale * jax.random.normal(ks[1], (1, D_MODEL), jnp.float32),
        "wc_t": scale * jax.random.normal(ks[2], (D_MODEL, D_MODEL), jnp.float32),
        "bc":   scale * jax.random.normal(ks[3], (1, D_MODEL), jnp.float32),
        "g1":   jnp.ones((1, D_MODEL), jnp.float32),
        "be1":  jnp.zeros((1, D_MODEL), jnp.float32),
        "w1_t": scale * jax.random.normal(ks[4], (D_MODEL, HIDDEN), jnp.float32),
        "b1":   scale * jax.random.normal(ks[5], (1, HIDDEN), jnp.float32),
        "w2_t": scale * jax.random.normal(ks[6], (HIDDEN, D_MODEL), jnp.float32),
        "b2":   scale * jax.random.normal(ks[7], (1, D_MODEL), jnp.float32),
        "g2":   jnp.ones((1, D_MODEL), jnp.float32),
        "be2":  jnp.zeros((1, D_MODEL), jnp.float32),
    }


if __name__ == "__main__":
    key = jax.random.PRNGKey(0)
    k_x, k_p = jax.random.split(key)
    x = jax.random.normal(k_x, (B, S, D_MODEL), jnp.float32)
    params = _init_params(k_p)

    module_out, y_kernel = encoder_layer_forward(x, params)
    module_out = jax.block_until_ready(module_out)
    y_kernel = jax.block_until_ready(y_kernel)

    # Tolerance is relaxed (2e-3) only because the softmax normalization uses
    # the approximate EUP reciprocal (pl.reciprocal(approx=True)); structural
    # errors would produce O(0.1-1) deviations and are still caught.
    y_ref = jax.block_until_ready(_reference_jax(x, params))
    assert jnp.allclose(y_kernel, y_ref, atol=2e-3, rtol=2e-3), "mismatch"
    # Module output matches reference semantics (forward returns input x).
    assert jnp.array_equal(module_out, x)

    print("KERNEL_OK")
</pallas_src>

<mosaic_0001>
module attributes {stable_mosaic.version = 11 : i64} {
  func.func @encoder_kernel(%arg0: memref<16x32xf32, #tpu.memory_space<vmem>>, %arg1: memref<8x8x32xf32, #tpu.memory_space<vmem>>, %arg2: memref<8x32x8xf32, #tpu.memory_space<vmem>>, %arg3: memref<8x8x8xf32, #tpu.memory_space<vmem>>, %arg4: memref<8x8x32xf32, #tpu.memory_space<vmem>>, %arg5: memref<104x128xf32, #tpu.memory_space<vmem>>, %arg6: memref<16x32xf32, #tpu.memory_space<vmem>>) attributes {dimension_semantics = [], scalar_prefetch = 0 : i64, scratch_operands = 0 : i64, tpu.core_type = #tpu.core_type<tc>} {
    %c0 = arith.constant 0 : index
    %c0_0 = arith.constant 0 : index
    %0 = vector.load %arg0[%c0, %c0_0] : memref<16x32xf32, #tpu.memory_space<vmem>>, vector<16x32xf32>
    %c0_1 = arith.constant 0 : index
    %c0_2 = arith.constant 0 : index
    %c0_3 = arith.constant 0 : index
    %1 = vector.load %arg1[%c0_1, %c0_2, %c0_3] : memref<8x8x32xf32, #tpu.memory_space<vmem>>, vector<8x8x32xf32>
    %c0_4 = arith.constant 0 : index
    %c0_5 = arith.constant 0 : index
    %c0_6 = arith.constant 0 : index
    %2 = vector.load %arg2[%c0_4, %c0_5, %c0_6] : memref<8x32x8xf32, #tpu.memory_space<vmem>>, vector<8x32x8xf32>
    %c0_7 = arith.constant 0 : index
    %c0_8 = arith.constant 0 : index
    %c0_9 = arith.constant 0 : index
    %3 = vector.load %arg4[%c0_7, %c0_8, %c0_9] : memref<8x8x32xf32, #tpu.memory_space<vmem>>, vector<8x8x32xf32>
    "tpu.trace_start"() <{level = 10 : i32, message = "gsk,gkd->gsd"}> : () -> ()
    %cst = arith.constant dense<0.000000e+00> : vector<8x8x8xf32>
    %4 = tpu.matmul %1, %2, %cst {dimension_numbers = #tpu.dot_dimension_numbers<[2], [1], [1], [2], [0, 0, 0, 1, 1, 2], [0], [0]>} : vector<8x8x32xf32>, vector<8x32x8xf32>, vector<8x8x8xf32> -> vector<8x8x8xf32>
    "tpu.trace_stop"() : () -> ()
    %c0_10 = arith.constant 0 : index
    %c0_11 = arith.constant 0 : index
    %c0_12 = arith.constant 0 : index
    %5 = vector.load %arg3[%c0_10, %c0_11, %c0_12] : memref<8x8x8xf32, #tpu.memory_space<vmem>>, vector<8x8x8xf32>
    %6 = arith.addf %4, %5 : vector<8x8x8xf32>
    "tpu.trace_start"() <{level = 10 : i32, message = "gqd,gkd->gqk"}> : () -> ()
    %cst_13 = arith.constant dense<0.000000e+00> : vector<8x8x8xf32>
    %7 = tpu.matmul %6, %6, %cst_13 {dimension_numbers = #tpu.dot_dimension_numbers<[2], [2], [1], [1], [0, 0, 0, 1, 1, 1], [0], [0]>} : vector<8x8x8xf32>, vector<8x8x8xf32>, vector<8x8x8xf32> -> vector<8x8x8xf32>
    "tpu.trace_stop"() : () -> ()
    %cst_14 = arith.constant 0.353553385 : f32
    %8 = vector.broadcast %cst_14 : f32 to vector<8x8x8xf32>
    %9 = arith.mulf %7, %8 : vector<8x8x8xf32>
    %cst_15 = arith.constant dense<0xFF800000> : vector<8x8xf32>
    %10 = vector.multi_reduction <maximumf>, %9, %cst_15 [2] : vector<8x8x8xf32> to vector<8x8xf32>
    %11 = vector.shape_cast %10 : vector<8x8xf32> to vector<8x8x1xf32>
    %12 = vector.broadcast %11 : vector<8x8x1xf32> to vector<8x8x8xf32>
    %13 = arith.subf %9, %12 : vector<8x8x8xf32>
    %14 = math.exp %13 : vector<8x8x8xf32>
    %cst_16 = arith.constant dense<0.000000e+00> : vector<8x8xf32>
    %15 = vector.multi_reduction <add>, %14, %cst_16 [2] : vector<8x8x8xf32> to vector<8x8xf32>
    %16 = vector.shape_cast %15 : vector<8x8xf32> to vector<8x8x1xf32>
    %17 = tpu.reciprocal %16 {approx = true} : vector<8x8x1xf32> -> vector<8x8x1xf32>
    %18 = vector.broadcast %17 : vector<8x8x1xf32> to vector<8x8x8xf32>
    %19 = arith.mulf %14, %18 : vector<8x8x8xf32>
    "tpu.trace_start"() <{level = 10 : i32, message = "gqk,gkd->gqd"}> : () -> ()
    %cst_17 = arith.constant dense<0.000000e+00> : vector<8x8x8xf32>
    %20 = tpu.matmul %19, %6, %cst_17 {dimension_numbers = #tpu.dot_dimension_numbers<[2], [1], [1], [2], [0, 0, 0, 1, 1, 2], [0], [0]>} : vector<8x8x8xf32>, vector<8x8x8xf32>, vector<8x8x8xf32> -> vector<8x8x8xf32>
    "tpu.trace_stop"() : () -> ()
    "tpu.trace_start"() <{level = 10 : i32, message = "gsd,gdm->gsm"}> : () -> ()
    %cst_18 = arith.constant dense<0.000000e+00> : vector<8x8x32xf32>
    %21 = tpu.matmul %20, %3, %cst_18 {dimension_numbers = #tpu.dot_dimension_numbers<[2], [1], [1], [2], [0, 0, 0, 1, 1, 2], [0], [0]>} : vector<8x8x8xf32>, vector<8x8x32xf32>, vector<8x8x32xf32> -> vector<8x8x32xf32>
    "tpu.trace_stop"() : () -> ()
    %22 = vector.extract_strided_slice %21 {offsets = [0, 0, 0], sizes = [2, 8, 32], strides = [1, 1, 1]} : vector<8x8x32xf32> to vector<2x8x32xf32>
    %23 = vector.extract_strided_slice %21 {offsets = [2, 0, 0], sizes = [2, 8, 32], strides = [1, 1, 1]} : vector<8x8x32xf32> to vector<2x8x32xf32>
    %24 = arith.addf %22, %23 : vector<2x8x32xf32>
    %25 = vector.extract_strided_slice %21 {offsets = [4, 0, 0], sizes = [2, 8, 32], strides = [1, 1, 1]} : vector<8x8x32xf32> to vector<2x8x32xf32>
    %26 = arith.addf %24, %25 : vector<2x8x32xf32>
    %27 = vector.extract_strided_slice %21 {offsets = [6, 0, 0], sizes = [2, 8, 32], strides = [1, 1, 1]} : vector<8x8x32xf32> to vector<2x8x32xf32>
    %28 = arith.addf %26, %27 : vector<2x8x32xf32>
    %29 = vector.shape_cast %28 : vector<2x8x32xf32> to vector<16x32xf32>
    %c96 = arith.constant 96 : index
    %c0_19 = arith.constant 0 : index
    %30 = vector.load %arg5[%c96, %c0_19] : memref<104x128xf32, #tpu.memory_space<vmem>>, vector<1x32xf32>
    %31 = vector.broadcast %30 : vector<1x32xf32> to vector<16x32xf32>
    %32 = arith.addf %29, %31 : vector<16x32xf32>
    %33 = arith.addf %32, %0 : vector<16x32xf32>
    %c97 = arith.constant 97 : index
    %c0_20 = arith.constant 0 : index
    %34 = vector.load %arg5[%c97, %c0_20] : memref<104x128xf32, #tpu.memory_space<vmem>>, vector<1x32xf32>
    %c98 = arith.constant 98 : index
    %c0_21 = arith.constant 0 : index
    %35 = vector.load %arg5[%c98, %c0_21] : memref<104x128xf32, #tpu.memory_space<vmem>>, vector<1x32xf32>
    %cst_22 = arith.constant dense<0.000000e+00> : vector<16xf32>
    %36 = vector.multi_reduction <add>, %33, %cst_22 [1] : vector<16x32xf32> to vector<16xf32>
    %37 = vector.shape_cast %36 : vector<16xf32> to vector<16x1xf32>
    %cst_23 = arith.constant 3.200000e+01 : f32
    %38 = vector.broadcast %cst_23 : f32 to vector<16x1xf32>
    %39 = arith.divf %37, %38 : vector<16x1xf32>
    %40 = vector.broadcast %39 : vector<16x1xf32> to vector<16x32xf32>
    %41 = arith.subf %33, %40 : vector<16x32xf32>
    %42 = arith.mulf %41, %41 : vector<16x32xf32>
    %cst_24 = arith.constant dense<0.000000e+00> : vector<16xf32>
    %43 = vector.multi_reduction <add>, %42, %cst_24 [1] : vector<16x32xf32> to vector<16xf32>
    %44 = vector.shape_cast %43 : vector<16xf32> to vector<16x1xf32>
    %cst_25 = arith.constant 3.200000e+01 : f32
    %45 = vector.broadcast %cst_25 : f32 to vector<16x1xf32>
    %46 = arith.divf %44, %45 : vector<16x1xf32>
    %47 = vector.broadcast %39 : vector<16x1xf32> to vector<16x32xf32>
    %48 = arith.subf %33, %47 : vector<16x32xf32>
    %cst_26 = arith.constant 9.99999996E-13 : f32
    %49 = vector.broadcast %cst_26 : f32 to vector<16x1xf32>
    %50 = arith.addf %46, %49 : vector<16x1xf32>
    %51 = math.rsqrt %50 : vector<16x1xf32>
    %52 = vector.broadcast %51 : vector<16x1xf32> to vector<16x32xf32>
    %53 = arith.mulf %48, %52 : vector<16x32xf32>
    %54 = vector.broadcast %34 : vector<1x32xf32> to vector<16x32xf32>
    %55 = arith.mulf %54, %53 : vector<16x32xf32>
    %56 = vector.broadcast %35 : vector<1x32xf32> to vector<16x32xf32>
    %57 = arith.addf %55, %56 : vector<16x32xf32>
    %c0_27 = arith.constant 0 : index
    %c0_28 = arith.constant 0 : index
    %58 = vector.load %arg5[%c0_27, %c0_28] : memref<104x128xf32, #tpu.memory_space<vmem>>, vector<32x64xf32>
    %c32 = arith.constant 32 : index
    %c0_29 = arith.constant 0 : index
    %59 = vector.load %arg5[%c32, %c0_29] : memref<104x128xf32, #tpu.memory_space<vmem>>, vector<64x32xf32>
    %c99 = arith.constant 99 : index
    %c0_30 = arith.constant 0 : index
    %60 = vector.load %arg5[%c99, %c0_30] : memref<104x128xf32, #tpu.memory_space<vmem>>, vector<1x64xf32>
    %c100 = arith.constant 100 : index
    %c0_31 = arith.constant 0 : index
    %61 = vector.load %arg5[%c100, %c0_31] : memref<104x128xf32, #tpu.memory_space<vmem>>, vector<1x32xf32>
    %cst_32 = arith.constant dense<0.000000e+00> : vector<16x64xf32>
    %62 = tpu.matmul %57, %58, %cst_32 {dimension_numbers = #tpu.dot_dimension_numbers<[1], [0], [0], [1], [0, 0, 1, 1], [], []>} : vector<16x32xf32>, vector<32x64xf32>, vector<16x64xf32> -> vector<16x64xf32>
    %63 = vector.broadcast %60 : vector<1x64xf32> to vector<16x64xf32>
    %64 = arith.addf %62, %63 : vector<16x64xf32>
    %cst_33 = arith.constant 0.000000e+00 : f32
    %65 = vector.broadcast %cst_33 : f32 to vector<16x64xf32>
    %66 = arith.maximumf %64, %65 : vector<16x64xf32>
    %cst_34 = arith.constant dense<0.000000e+00> : vector<16x32xf32>
    %67 = tpu.matmul %66, %59, %cst_34 {dimension_numbers = #tpu.dot_dimension_numbers<[1], [0], [0], [1], [0, 0, 1, 1], [], []>} : vector<16x64xf32>, vector<64x32xf32>, vector<16x32xf32> -> vector<16x32xf32>
    %68 = vector.broadcast %61 : vector<1x32xf32> to vector<16x32xf32>
    %69 = arith.addf %67, %68 : vector<16x32xf32>
    %70 = arith.addf %69, %57 : vector<16x32xf32>
    %c101 = arith.constant 101 : index
    %c0_35 = arith.constant 0 : index
    %71 = vector.load %arg5[%c101, %c0_35] : memref<104x128xf32, #tpu.memory_space<vmem>>, vector<1x32xf32>
    %c102 = arith.constant 102 : index
    %c0_36 = arith.constant 0 : index
    %72 = vector.load %arg5[%c102, %c0_36] : memref<104x128xf32, #tpu.memory_space<vmem>>, vector<1x32xf32>
    %cst_37 = arith.constant dense<0.000000e+00> : vector<16xf32>
    %73 = vector.multi_reduction <add>, %70, %cst_37 [1] : vector<16x32xf32> to vector<16xf32>
    %74 = vector.shape_cast %73 : vector<16xf32> to vector<16x1xf32>
    %cst_38 = arith.constant 3.200000e+01 : f32
    %75 = vector.broadcast %cst_38 : f32 to vector<16x1xf32>
    %76 = arith.divf %74, %75 : vector<16x1xf32>
    %77 = vector.broadcast %76 : vector<16x1xf32> to vector<16x32xf32>
    %78 = arith.subf %70, %77 : vector<16x32xf32>
    %79 = arith.mulf %78, %78 : vector<16x32xf32>
    %cst_39 = arith.constant dense<0.000000e+00> : vector<16xf32>
    %80 = vector.multi_reduction <add>, %79, %cst_39 [1] : vector<16x32xf32> to vector<16xf32>
    %81 = vector.shape_cast %80 : vector<16xf32> to vector<16x1xf32>
    %cst_40 = arith.constant 3.200000e+01 : f32
    %82 = vector.broadcast %cst_40 : f32 to vector<16x1xf32>
    %83 = arith.divf %81, %82 : vector<16x1xf32>
    %84 = vector.broadcast %76 : vector<16x1xf32> to vector<16x32xf32>
    %85 = arith.subf %70, %84 : vector<16x32xf32>
    %cst_41 = arith.constant 9.99999996E-13 : f32
    %86 = vector.broadcast %cst_41 : f32 to vector<16x1xf32>
    %87 = arith.addf %83, %86 : vector<16x1xf32>
    %88 = math.rsqrt %87 : vector<16x1xf32>
    %89 = vector.broadcast %88 : vector<16x1xf32> to vector<16x32xf32>
    %90 = arith.mulf %85, %89 : vector<16x32xf32>
    %91 = vector.broadcast %71 : vector<1x32xf32> to vector<16x32xf32>
    %92 = arith.mulf %91, %90 : vector<16x32xf32>
    %93 = vector.broadcast %72 : vector<1x32xf32> to vector<16x32xf32>
    %94 = arith.addf %92, %93 : vector<16x32xf32>
    %c0_42 = arith.constant 0 : index
    %c0_43 = arith.constant 0 : index
    %95 = vector.load %arg6[%c0_42, %c0_43] : memref<16x32xf32, #tpu.memory_space<vmem>>, vector<16x32xf32>
    tpu.vector_store %arg6[%c0_42, %c0_43], %94 {strides = array<i32>} : memref<16x32xf32, #tpu.memory_space<vmem>>, vector<16x32xf32>,
    return
  }
}

</mosaic_0001>

<bundles_post_ra>
// kernel: tpu_custom_call.1
= control target key start
LH: loop header
LB: loop body
LE: loop exit
PB: predicated region body
PF: predicated region fallthrough
CT: control target
= control target key end

     0   :  { %v3279_v2 = vmov 0.0   ;;  %vm82_vm0 = vcmask 261120   ;;  %vm3280_vm1 = vmmov 0   ;;  %s3771_s0 = inlined_call_operand.vmem [shape: f32[16,32], index: 0, kind: input, shape index: {}]   ;;  %s3772_s1 = inlined_call_operand.vmem [shape: f32[8,8,32], index: 1, kind: input, shape index: {}]   ;;  %s3773_s2 = inlined_call_operand.vmem [shape: f32[8,32,8], index: 2, kind: input, shape index: {}]   ;;  %s3774_s3 = inlined_call_operand.vmem [shape: f32[8,8,8], index: 3, kind: input, shape index: {}]   ;;  %s3775_s4 = inlined_call_operand.vmem [shape: f32[8,8,32], index: 4, kind: input, shape index: {}]   ;;  %s3776_s5 = inlined_call_operand.vmem [shape: f32[104,128], index: 5, kind: input, shape index: {}]   ;;  %s3777_s6 = inlined_call_operand.hbm [shape: f32[16,32], index: 6, kind: output, shape index: {}]  }
   0x1   :  { %v37_v0 = vld [vmem:[%s3773_s2 + $0x18] sm:$0xff]  ;;  %2974 = vmatprep.subr.mxu0 %v3279_v2  ;;  %2985 = vmatprep.subr.mxu1 %v3279_v2  ;;  %v36_v3 = vld [vmem:[%s3773_s2 + $0x10] sm:$0xff]  ;;  %v35_v5 = vld [vmem:[%s3773_s2 + $0x8] sm:$0xff] }
   0x2   :  { %v41_v1 = vld [vmem:[%s3773_s2 + $0x38] sm:$0xff]  ;;  %v40_v4 = vld [vmem:[%s3773_s2 + $0x30] sm:$0xff]  ;;  %2975 = vmatpush3.msra.mxu0 %v37_v0  ;;  %v39_v6 = vld [vmem:[%s3773_s2 + $0x28] sm:$0xff]  ;;  %2982 = vmatprep.mubr.msk.f32.mxu0 %vm3280_vm1, %v3279_v2 }
   0x3   :  { %2986 = vmatpush3.msra.mxu1 %v41_v1  ;;  %2976 = vmatprep.subr.mxu0 %v3279_v2  ;;  %v34_v7 = vld [vmem:[%s3773_s2] sm:$0xff]  ;;  %v27_v10 = vld [vmem:[%s3772_s1 + $0x8] sm:$0xff]  ;;  %v45_v11 = vld [vmem:[%s3773_s2 + $0x58] sm:$0xff] }
   0x4   :  { %2987 = vmatprep.subr.mxu1 %v3279_v2  ;;  %2977 = vmatpush3.msra.mxu0 %v36_v3  ;;  %v38_v8 = vld [vmem:[%s3773_s2 + $0x20] sm:$0xff]  ;;  %v49_v12 = vld [vmem:[%s3773_s2 + $0x78] sm:$0xff]  ;;  %v44_v13 = vld [vmem:[%s3773_s2 + $0x50] sm:$0xff] }
   0x5   :  { %2988 = vmatpush3.msra.mxu1 %v40_v4  ;;  %2978 = vmatprep.subr.mxu0 %v3279_v2  ;;  %v26_v9 = vld [vmem:[%s3772_s1] sm:$0xff]  ;;  %v48_v14 = vld [vmem:[%s3773_s2 + $0x70] sm:$0xff]  ;;  %v43_v15 = vld [vmem:[%s3773_s2 + $0x48] sm:$0xff] }
   0x6   :  { %2989 = vmatprep.subr.mxu1 %v3279_v2  ;;  %2979 = vmatpush3.msra.mxu0 %v35_v5  ;;  %v47_v16 = vld [vmem:[%s3773_s2 + $0x68] sm:$0xff] }
   0x7   :  { %2990 = vmatpush3.msra.mxu1 %v39_v6  ;;  %2980 = vmatprep.subr.mxu0 %v3279_v2 }
   0x8   :  { %2991 = vmatprep.subr.mxu1 %v3279_v2  ;;  %2981 = vmatpush3.msra.mxu0 %v34_v7 }
   0x9   :  { %2992 = vmatpush3.msra.mxu1 %v38_v8  ;;  %2993 = vmatprep.mubr.msk.f32.mxu1 %vm3280_vm1, %v3279_v2 }
   0xa   :  { %2983 = vmatmul.mubr.msk.f32.vlgmr.msra.gmra.mxu0 %vm82_vm0, %v26_v9  ;;  %2994 = vmatmul.mubr.msk.f32.vlgmr.msra.gmra.mxu1 %vm82_vm0, %v27_v10 }
   0xb   :  { %2996 = vmatprep.subr.mxu0 %v3279_v2  ;;  %3007 = vmatprep.subr.mxu1 %v3279_v2 }
   0xc   :  { %2997 = vmatpush3.msra.mxu0 %v45_v11  ;;  %3008 = vmatpush3.msra.mxu1 %v49_v12 }
   0xd   :  { %2998 = vmatprep.subr.mxu0 %v3279_v2  ;;  %3009 = vmatprep.subr.mxu1 %v3279_v2 }
   0xe   :  { %11 = vsyncpa [#allocation3], 0  ;;  %2999 = vmatpush3.msra.mxu0 %v44_v13  ;;  %3010 = vmatpush3.msra.mxu1 %v48_v14  ;;  %v42_v17 = vld [vmem:[%s3773_s2 + $0x40] sm:$0xff]  ;;  %v28_v19 = vld [vmem:[%s3772_s1 + $0x10] sm:$0xff]  ;;  %vm667_vm2 = vcmask 64512   ;;  %vm2677_vm3 = vcmask 523264  }
   0xf   :  { %3000 = vmatprep.subr.mxu0 %v3279_v2  ;;  %3011 = vmatprep.subr.mxu1 %v3279_v2  ;;  %v46_v18 = vld [vmem:[%s3773_s2 + $0x60] sm:$0xff]  ;;  %v29_v20 = vld [vmem:[%s3772_s1 + $0x18] sm:$0xff]  ;;  %v52_v23 = vld [vmem:[%s3773_s2 + $0x90] sm:$0xff] }
  0x10   :  { %3001 = vmatpush3.msra.mxu0 %v43_v15  ;;  %3012 = vmatpush3.msra.mxu1 %v47_v16  ;;  %v53_v21 = vld [vmem:[%s3773_s2 + $0x98] sm:$0xff]  ;;  %v56_v24 = vld [vmem:[%s3773_s2 + $0xb0] sm:$0xff]  ;;  %v51_v25 = vld [vmem:[%s3773_s2 + $0x88] sm:$0xff] }
  0x11   :  { %3002 = vmatprep.subr.mxu0 %v3279_v2  ;;  %3013 = vmatprep.subr.mxu1 %v3279_v2  ;;  %v57_v22 = vld [vmem:[%s3773_s2 + $0xb8] sm:$0xff]  ;;  %v55_v26 = vld [vmem:[%s3773_s2 + $0xa8] sm:$0xff]  ;;  %v50_v27 = vld [vmem:[%s3773_s2 + $0x80] sm:$0xff] }
  0x12   :  { %3003 = vmatpush3.msra.mxu0 %v42_v17  ;;  %3004 = vmatprep.mubr.msk.f32.mxu0 %vm3280_vm1, %v3279_v2  ;;  %v54_v28 = vld [vmem:[%s3773_s2 + $0xa0] sm:$0xff]  ;;  %v31_v30 = vld [vmem:[%s3772_s1 + $0x28] sm:$0xff]  ;;  %v61_v31 = vld [vmem:[%s3773_s2 + $0xd8] sm:$0xff] }
  0x13   :  { %3014 = vmatpush3.msra.mxu1 %v46_v18  ;;  %3015 = vmatprep.mubr.msk.f32.mxu1 %vm3280_vm1, %v3279_v2  ;;  %v30_v29 = vld [vmem:[%s3772_s1 + $0x20] sm:$0xff]  ;;  %v65_v32 = vld [vmem:[%s3773_s2 + $0xf8] sm:$0xff]  ;;  %v60_v33 = vld [vmem:[%s3773_s2 + $0xd0] sm:$0xff] }
  0x14   :  { %3005 = vmatmul.mubr.msk.f32.vlgmr.msra.gmra.mxu0 %vm82_vm0, %v28_v19  ;;  %3016 = vmatmul.mubr.msk.f32.vlgmr.msra.gmra.mxu1 %vm82_vm0, %v29_v20  ;;  %v64_v34 = vld [vmem:[%s3773_s2 + $0xf0] sm:$0xff]  ;;  %v59_v35 = vld [vmem:[%s3773_s2 + $0xc8] sm:$0xff]  ;;  %v58_v37 = vld [vmem:[%s3773_s2 + $0xc0] sm:$0xff] }
  0x15   :  { %3018 = vmatprep.subr.mxu0 %v3279_v2  ;;  %3029 = vmatprep.subr.mxu1 %v3279_v2  ;;  %v63_v36 = vld [vmem:[%s3773_s2 + $0xe8] sm:$0xff]  ;;  %v62_v38 = vld [vmem:[%s3773_s2 + $0xe0] sm:$0xff]  ;;  %v32_v39 = vld [vmem:[%s3772_s1 + $0x30] sm:$0xff] }
  0x16   :  { %3019 = vmatpush3.msra.mxu0 %v53_v21  ;;  %3030 = vmatpush3.msra.mxu1 %v57_v22  ;;  %v33_v40 = vld [vmem:[%s3772_s1 + $0x38] sm:$0xff]  ;;  %v74_v41 = vld [vmem:[%s3774_s3] sm:$0xff]  ;;  %v75_v45 = vld [vmem:[%s3774_s3 + $0x8] sm:$0xff] }
  0x17   :  { %3020 = vmatprep.subr.mxu0 %v3279_v2  ;;  %3031 = vmatprep.subr.mxu1 %v3279_v2  ;;  %v76_v49 = vld [vmem:[%s3774_s3 + $0x10] sm:$0xff]  ;;  %v77_v50 = vld [vmem:[%s3774_s3 + $0x18] sm:$0xff]  ;;  %v78_v57 = vld [vmem:[%s3774_s3 + $0x20] sm:$0xff] }
  0x18   :  { %3021 = vmatpush3.msra.mxu0 %v52_v23  ;;  %3032 = vmatpush3.msra.mxu1 %v56_v24  ;;  %v79_v58 = vld [vmem:[%s3774_s3 + $0x28] sm:$0xff]  ;;  %v80_v1 = vld [vmem:[%s3774_s3 + $0x30] sm:$0xff]  ;;  %v81_v3 = vld [vmem:[%s3774_s3 + $0x38] sm:$0xff]  ;;  %s3281_s3 = smov [#allocation2]  }
  0x19   :  { %3022 = vmatprep.subr.mxu0 %v3279_v2  ;;  %3033 = vmatprep.subr.mxu1 %v3279_v2  ;;  %s2808_s19 = sshll.u32 %s3281_s3, 4  ;;  %s2809_s19 = int_to_ptr.vmem [resolvable:$true] %s2808_s19 }
  0x1a   :  { %3023 = vmatpush3.msra.mxu0 %v51_v25  ;;  %3034 = vmatpush3.msra.mxu1 %v55_v26  ;;  %s3257_s20 = scalar_lea.vmem %s2809_s19, 256  ;;  %p3262_p1 = scmp.lt.s32.totalorder %s2809_s19, %s2809_s19 }
  0x1b   :  { %3024 = vmatprep.subr.mxu0 %v3279_v2  ;;  %3035 = vmatprep.subr.mxu1 %v3279_v2  ;;  %p3258_p0 = scmp.ne.s32.totalorder %s2809_s19, %s3257_s20  ;;  %p3263_p2 = scmp.lt.s32.totalorder %s3257_s20, %s3257_s20 }
  0x1c   :  { %3025 = vmatpush3.msra.mxu0 %v50_v27  ;;  %3026 = vmatprep.mubr.msk.f32.mxu0 %vm3280_vm1, %v3279_v2 }
  0x1d   :  { %3036 = vmatpush3.msra.mxu1 %v54_v28  ;;  %3037 = vmatprep.mubr.msk.f32.mxu1 %vm3280_vm1, %v3279_v2  ;;  %p3264_p3 = por %p3263_p2, %p3262_p1 }
  0x1e   :  { %3027 = vmatmul.mubr.msk.f32.vlgmr.msra.gmra.mxu0 %vm82_vm0, %v30_v29  ;;  %3038 = vmatmul.mubr.msk.f32.vlgmr.msra.gmra.mxu1 %vm82_vm0, %v31_v30 }
  0x1f   :  { %3040 = vmatprep.subr.mxu0 %v3279_v2  ;;  %3051 = vmatprep.subr.mxu1 %v3279_v2  ;;  %p3265_p4 = pnand %p3264_p3, %p3258_p0 }
  0x20   :  { %3041 = vmatpush3.msra.mxu0 %v61_v31  ;;  %3052 = vmatpush3.msra.mxu1 %v65_v32 }
  0x21   :  { %3042 = vmatprep.subr.mxu0 %v3279_v2  ;;  %3053 = vmatprep.subr.mxu1 %v3279_v2 }
  0x22   :  { %3043 = vmatpush3.msra.mxu0 %v60_v33  ;;  %3054 = vmatpush3.msra.mxu1 %v64_v34 }
  0x23   :  { %3044 = vmatprep.subr.mxu0 %v3279_v2  ;;  %3055 = vmatprep.subr.mxu1 %v3279_v2 }
  0x24   :  { %3045 = vmatpush3.msra.mxu0 %v59_v35  ;;  %3056 = vmatpush3.msra.mxu1 %v63_v36 }
  0x25   :  { %3046 = vmatprep.subr.mxu0 %v3279_v2  ;;  %3057 = vmatprep.subr.mxu1 %v3279_v2 }
  0x26   :  { %3047 = vmatpush3.msra.mxu0 %v58_v37  ;;  %3048 = vmatprep.mubr.msk.f32.mxu0 %vm3280_vm1, %v3279_v2 }
  0x27   :  { %3058 = vmatpush3.msra.mxu1 %v62_v38  ;;  %3059 = vmatprep.mubr.msk.f32.mxu1 %vm3280_vm1, %v3279_v2 }
  0x28   :  { %3049 = vmatmul.mubr.msk.f32.vlgmr.msra.gmra.mxu0 %vm82_vm0, %v32_v39  ;;  %3060 = vmatmul.mubr.msk.f32.vlgmr.msra.gmra.mxu1 %vm82_vm0, %v33_v40 }
  0x29   :  { %3062 = vmatprep.subr.mxu0 %v3279_v2  ;;  %3064 = vmatprep.mubr.msk.f32.mxu0 %vm3280_vm1, %v3279_v2 }
  0x2a   :  { %3077 = vmatprep.subr.mxu1 %v3279_v2  ;;  %3079 = vmatprep.mubr.msk.f32.mxu1 %vm3280_vm1, %v3279_v2 }
  0xca   :  { %v152_v42 = vpop.f32.mrf.mxu0  ;;  %v225_v43 = vpop.f32.mrf.mxu1 }
  0xcb   :  { %v153_v44 = vadd.f32 %v152_v42, %v74_v41  ;;  %v226_v48 = vadd.f32 %v225_v43, %v75_v45 }
  0xcc   :  { %v2984_v46 = vpop.f32.mrf.mxu0  ;;  %v2995_v47 = vpop.f32.mrf.mxu1 }
  0xcd   :  { %3063 = vmatpush3.xpose.msk.msra.mxu0 %vm667_vm2, %v153_v44 }
  0xce   :  { %3067 = vmatprep.subr.mxu0 %v3279_v2 }
  0xd0   :  { %3065 = vmatmul.mubr.msk.f32.vlgmr.msra.gmra.mxu0 %vm667_vm2, %v153_v44 }
  0xd1   :  { %3068 = vmatpush3.xpose.msk.msra.mxu0 %vm667_vm2, %v226_v48  ;;  %3069 = vmatprep.mubr.msk.f32.mxu0 %vm3280_vm1, %v3279_v2 }
  0xd2   :  { %3072 = vmatprep.subr.mxu0 %v3279_v2 }
  0xd4   :  { %v298_v51 = vpop.f32.mrf.mxu0  ;;  %v371_v52 = vpop.f32.mrf.mxu1  ;;  %3070 = vmatmul.mubr.msk.f32.vlgmr.msra.gmra.mxu0 %vm667_vm2, %v226_v48 }
  0xd5   :  { %v3521_v53 = vadd.f32 %v298_v51, %v76_v49  ;;  %v3523_v54 = vadd.f32 %v371_v52, %v77_v50  ;;  %3074 = vmatprep.mubr.msk.f32.mxu0 %vm3280_vm1, %v3279_v2 }
  0xd6   :  { %v3006_v55 = vpop.f32.mrf.mxu0  ;;  %v3017_v56 = vpop.f32.mrf.mxu1 }
  0xd7   :  { %3073 = vmatpush3.xpose.msk.msra.mxu0 %vm667_vm2, %v3521_v53  ;;  %3078 = vmatpush3.xpose.msk.msra.mxu1 %vm667_vm2, %v3523_v54 }
  0xd8   :  { %3082 = vmatprep.subr.mxu0 %v3279_v2  ;;  %3087 = vmatprep.subr.mxu1 %v3279_v2 }
  0xda   :  { %3075 = vmatmul.mubr.msk.f32.vlgmr.msra.gmra.mxu0 %vm667_vm2, %v3521_v53  ;;  %3080 = vmatmul.mubr.msk.f32.vlgmr.msra.gmra.mxu1 %vm667_vm2, %v3523_v54 }
  0xdb   :  { %3084 = vmatprep.mubr.msk.f32.mxu0 %vm3280_vm1, %v3279_v2  ;;  %3089 = vmatprep.mubr.msk.f32.mxu1 %vm3280_vm1, %v3279_v2 }
  0xde   :  { %v444_v59 = vpop.f32.mrf.mxu0  ;;  %v517_v60 = vpop.f32.mrf.mxu1 }
  0xdf   :  { %v3547_v61 = vadd.f32 %v444_v59, %v78_v57  ;;  %v3549_v62 = vadd.f32 %v517_v60, %v79_v58 }
  0xe0   :  { %v3028_v63 = vpop.f32.mrf.mxu0  ;;  %v3039_v0 = vpop.f32.mrf.mxu1 }
  0xe1   :  { %3083 = vmatpush3.xpose.msk.msra.mxu0 %vm667_vm2, %v3547_v61  ;;  %3088 = vmatpush3.xpose.msk.msra.mxu1 %vm667_vm2, %v3549_v62 }
  0xe2   :  { %3092 = vmatprep.subr.mxu0 %v3279_v2  ;;  %3097 = vmatprep.subr.mxu1 %v3279_v2 }
  0xe4   :  { %3085 = vmatmul.mubr.msk.f32.vlgmr.msra.gmra.mxu0 %vm667_vm2, %v3547_v61  ;;  %3090 = vmatmul.mubr.msk.f32.vlgmr.msra.gmra.mxu1 %vm667_vm2, %v3549_v62 }
  0xe5   :  { %3094 = vmatprep.mubr.msk.f32.mxu0 %vm3280_vm1, %v3279_v2  ;;  %3099 = vmatprep.mubr.msk.f32.mxu1 %vm3280_vm1, %v3279_v2 }
  0xe8   :  { %v590_v4 = vpop.f32.mrf.mxu0  ;;  %v663_v5 = vpop.f32.mrf.mxu1 }
  0xe9   :  { %v3571_v6 = vadd.f32 %v590_v4, %v80_v1  ;;  %v3573_v7 = vadd.f32 %v663_v5, %v81_v3 }
  0xea   :  { %v3050_v8 = vpop.f32.mrf.mxu0  ;;  %v3061_v9 = vpop.f32.mrf.mxu1 }
  0xeb   :  { %3093 = vmatpush3.xpose.msk.msra.mxu0 %vm667_vm2, %v3571_v6  ;;  %3098 = vmatpush3.xpose.msk.msra.mxu1 %vm667_vm2, %v3573_v7 }
  0xec   :  { %3102 = vmatprep.subr.mxu0 %v3279_v2  ;;  %3107 = vmatprep.subr.mxu1 %v3279_v2 }
  0xee   :  { %3095 = vmatmul.mubr.msk.f32.vlgmr.msra.gmra.mxu0 %vm667_vm2, %v3571_v6  ;;  %3100 = vmatmul.mubr.msk.f32.vlgmr.msra.gmra.mxu1 %vm667_vm2, %v3573_v7 }
  0xef   :  { %3103 = vmatpush3.msra.mxu0 %v153_v44  ;;  %3108 = vmatpush3.msra.mxu1 %v226_v48 }
  0xf0   :  { %3104 = vmatprep.mubr.msk.f32.mxu0 %vm3280_vm1, %v3279_v2  ;;  %3112 = vmatprep.subr.mxu0 %v3279_v2 }
  0xf1   :  { %3109 = vmatprep.mubr.msk.f32.mxu1 %vm3280_vm1, %v3279_v2  ;;  %3117 = vmatprep.subr.mxu1 %v3279_v2 }
 0x190   :  { %v737_v10 = vpop.f32.mrf.mxu0 }
 0x191   :  { %v1252_v11 = vmul.f32 0.35355338, %v737_v10 }
 0x192   :  { %v3066_v12 = vpop.f32.mrf.mxu0 }
 0x193   :  { %v1260_v13 = vsel %vm667_vm2, %v1252_v11, -inf }
 0x194   :  { %1261 = vmax.xlane.f32.xlu0 %v1260_v13  ;;  %v810_v14 = vpop.f32.mrf.mxu0 }
 0x195   :  { %v1253_v15 = vmul.f32 0.35355338, %v810_v14 }
 0x196   :  { %v3071_v16 = vpop.f32.mrf.mxu0 }
 0x197   :  { %v1263_v17 = vsel %vm667_vm2, %v1253_v15, -inf }
 0x198   :  { %1264 = vmax.xlane.f32.xlu0 %v1263_v17 }
 0x19a   :  { %v956_v18 = vpop.f32.mrf.mxu1  ;;  %v883_v19 = vpop.f32.mrf.mxu0 }
 0x19b   :  { %v1254_v20 = vmul.f32 0.35355338, %v883_v19  ;;  %v1255_v23 = vmul.f32 0.35355338, %v956_v18 }
 0x19c   :  { %v3076_v21 = vpop.f32.mrf.mxu0  ;;  %v3081_v22 = vpop.f32.mrf.mxu1 }
 0x19d   :  { %v1266_v24 = vsel %vm667_vm2, %v1254_v20, -inf  ;;  %v1269_v25 = vsel %vm667_vm2, %v1255_v23, -inf }
 0x19e   :  { %1267 = vmax.xlane.f32.xlu1 %v1266_v24 }
 0x1a2   :  { %1270 = vmax.xlane.f32.xlu1 %v1269_v25 }
 0x1a4   :  { %v1102_v26 = vpop.f32.mrf.mxu1  ;;  %v1029_v27 = vpop.f32.mrf.mxu0 }
 0x1a5   :  { %v1257_v28 = vmul.f32 0.35355338, %v1102_v26  ;;  %v1256_v29 = vmul.f32 0.35355338, %v1029_v27 }
 0x1a6   :  { %v3086_v30 = vpop.f32.mrf.mxu0  ;;  %v3091_v31 = vpop.f32.mrf.mxu1 }
 0x1a7   :  { %v1275_v32 = vsel %vm667_vm2, %v1257_v28, -inf  ;;  %v1272_v33 = vsel %vm667_vm2, %v1256_v29, -inf }
 0x1a8   :  { %1276 = vmax.xlane.f32.xlu1 %v1275_v32  ;;  %1273 = vmax.xlane.f32.xlu0 %v1272_v33 }
 0x1ae   :  { %v1175_v34 = vpop.f32.mrf.mxu0  ;;  %v1248_v35 = vpop.f32.mrf.mxu1 }
 0x1af   :  { %v1258_v36 = vmul.f32 0.35355338, %v1175_v34  ;;  %v1259_v37 = vmul.f32 0.35355338, %v1248_v35 }
 0x1b0   :  { %v3096_v38 = vpop.f32.mrf.mxu0  ;;  %v3101_v39 = vpop.f32.mrf.mxu1 }
 0x1b1   :  { %v1281_v40 = vsel %vm667_vm2, %v1259_v37, -inf  ;;  %v1278_v41 = vsel %vm667_vm2, %v1258_v36, -inf }
 0x1b2   :  { %1282 = vmax.xlane.f32.xlu1 %v1281_v40  ;;  %1279 = vmax.xlane.f32.xlu0 %v1278_v41 }
 0x21d   :  { %v1262_v42 = vpop.xlane.xlu0 %1261 }
 0x21e   :  { %v1284_v43 = vsub.f32 %v1252_v11, %v1262_v42 }
 0x220   :  { %v1292_v44 = vmul.f32 1.442695, %v1284_v43 }
 0x221   :  { %v1265_v45 = vpop.xlane.xlu0 %1264 }
 0x222   :  { %3217 = vpow2.f32 %v1292_v44  ;;  %v1285_v46 = vsub.f32 %v1253_v15, %v1265_v45  ;;  %v68_v45 = vld [vmem:[%s3775_s4 + $0x10] sm:$0xff] }
 0x224   :  { %v1294_v47 = vmul.f32 1.442695, %v1285_v46 }
 0x226   :  { %3219 = vpow2.f32 %v1294_v47 }
 0x227   :  { %v1268_v48 = vpop.xlane.xlu1 %1267 }
 0x228   :  { %v1286_v49 = vsub.f32 %v1254_v20, %v1268_v48  ;;  %v69_v48 = vld [vmem:[%s3775_s4 + $0x18] sm:$0xff] }
 0x22a   :  { %v1296_v50 = vmul.f32 1.442695, %v1286_v49 }
 0x22b   :  { %v1271_v51 = vpop.xlane.xlu1 %1270 }
 0x22c   :  { %3221 = vpow2.f32 %v1296_v50  ;;  %v1287_v52 = vsub.f32 %v1255_v23, %v1271_v51  ;;  %v70_v51 = vld [vmem:[%s3775_s4 + $0x20] sm:$0xff] }
 0x22e   :  { %v1298_v55 = vmul.f32 1.442695, %v1287_v52 }
 0x22f   :  { %v3218_v56 = vpop.eup %3217 }
 0x230   :  { %3223 = vpow2.f32 %v1298_v55  ;;  %v1308_v57 = vsel %vm667_vm2, %v3218_v56, 0.0 }
 0x231   :  { %v1277_v58 = vpop.xlane.xlu1 %1276  ;;  %v1274_v59 = vpop.xlane.xlu0 %1273  ;;  %1309 = vadd.xlane.f32.xlu0 %v1308_v57 }
 0x232   :  { %v1289_v60 = vsub.f32 %v1257_v28, %v1277_v58  ;;  %v1288_v63 = vsub.f32 %v1256_v29, %v1274_v59  ;;  %v73_v59 = vld [vmem:[%s3775_s4 + $0x38] sm:$0xff] }
 0x233   :  { %v3220_v0 = vpop.eup %3219 }
 0x234   :  { %v1302_v1 = vmul.f32 1.442695, %v1289_v60  ;;  %v1300_v3 = vmul.f32 1.442695, %v1288_v63  ;;  %v1311_v4 = vsel %vm667_vm2, %v3220_v0, 0.0  ;;  %v72_v63 = vld [vmem:[%s3775_s4 + $0x30] sm:$0xff] }
 0x235   :  { %1312 = vadd.xlane.f32.xlu1 %v1311_v4 }
 0x236   :  { %3225 = vpow2.f32 %v1302_v1 }
 0x237   :  { %3227 = vpow2.f32 %v1300_v3 }
 0x239   :  { %v3222_v5 = vpop.eup %3221 }
 0x23a   :  { %v1314_v8 = vsel %vm667_vm2, %v3222_v5, 0.0 }
 0x23b   :  { %v1283_v9 = vpop.xlane.xlu1 %1282  ;;  %v1280_v10 = vpop.xlane.xlu0 %1279  ;;  %1315 = vadd.xlane.f32.xlu0 %v1314_v8 }
 0x23c   :  { %v1291_v11 = vsub.f32 %v1259_v37, %v1283_v9  ;;  %v1290_v12 = vsub.f32 %v1258_v36, %v1280_v10 }
 0x23d   :  { %v3224_v13 = vpop.eup %3223 }
 0x23e   :  { %v1306_v14 = vmul.f32 1.442695, %v1291_v11  ;;  %v1304_v15 = vmul.f32 1.442695, %v1290_v12  ;;  %v1317_v16 = vsel %vm667_vm2, %v3224_v13, 0.0 }
 0x23f   :  { %1318 = vadd.xlane.f32.xlu1 %v1317_v16 }
 0x240   :  { %3229 = vpow2.f32 %v1306_v14 }
 0x241   :  { %3231 = vpow2.f32 %v1304_v15 }
 0x243   :  { %v3226_v17 = vpop.eup %3225 }
 0x244   :  { %v3228_v18 = vpop.eup %3227  ;;  %v1323_v19 = vsel %vm667_vm2, %v3226_v17, 0.0 }
 0x245   :  { %1324 = vadd.xlane.f32.xlu1 %v1323_v19  ;;  %v1320_v20 = vsel %vm667_vm2, %v3228_v18, 0.0 }
 0x246   :  { %1321 = vadd.xlane.f32.xlu0 %v1320_v20 }
 0x24d   :  { %v3230_v21 = vpop.eup %3229 }
 0x24e   :  { %v3232_v22 = vpop.eup %3231  ;;  %v1329_v23 = vsel %vm667_vm2, %v3230_v21, 0.0 }
 0x24f   :  { %1330 = vadd.xlane.f32.xlu1 %v1329_v23  ;;  %v1326_v24 = vsel %vm667_vm2, %v3232_v22, 0.0 }
 0x250   :  { %1327 = vadd.xlane.f32.xlu0 %v1326_v24 }
 0x2ba   :  { %v1310_v25 = vpop.xlane.xlu0 %1309 }
 0x2bb   :  { %3233 = vrcp.f32 %v1310_v25  ;;  %v2859_v25 = vld [vmem:[%s3776_s5 + $0x60] ss:$0 sm:$0xff] }
 0x2be   :  { %v1313_v26 = vpop.xlane.xlu1 %1312 }
 0x2bf   :  { %3235 = vrcp.f32 %v1313_v26 }
 0x2c4   :  { %v1316_v27 = vpop.xlane.xlu0 %1315 }
 0x2c5   :  { %3237 = vrcp.f32 %v1316_v27 }
 0x2c8   :  { %v3234_v28 = vpop.eup %3233  ;;  %v1319_v29 = vpop.xlane.xlu1 %1318 }
 0x2c9   :  { %3239 = vrcp.f32 %v1319_v29  ;;  %v1340_v30 = vmul.f32 %v3234_v28, %v3218_v56  ;;  %v71_v56 = vld [vmem:[%s3775_s4 + $0x28] sm:$0xff] }
 0x2cb   :  { %3105 = vmatmul.mubr.msk.f32.vlgmr.msra.gmra.mxu0 %vm667_vm2, %v1340_v30 }
 0x2cc   :  { %v3236_v31 = vpop.eup %3235  ;;  %3113 = vmatpush3.msra.mxu0 %v3521_v53  ;;  %3114 = vmatprep.mubr.msk.f32.mxu0 %vm3280_vm1, %v3279_v2 }
 0x2cd   :  { %v1341_v32 = vmul.f32 %v3236_v31, %v3220_v0  ;;  %3122 = vmatprep.subr.mxu0 %v3279_v2  ;;  %v25_v31 = vld [vmem:[%s3771_s0 + $0x8] sm:$0xff] }
 0x2ce   :  { %v1325_v33 = vpop.xlane.xlu1 %1324 }
 0x2cf   :  { %3241 = vrcp.f32 %v1325_v33  ;;  %v1322_v34 = vpop.xlane.xlu0 %1321  ;;  %3110 = vmatmul.mubr.msk.f32.vlgmr.msra.gmra.mxu1 %vm667_vm2, %v1341_v32 }
 0x2d0   :  { %3243 = vrcp.f32 %v1322_v34  ;;  %3118 = vmatpush3.msra.mxu1 %v3523_v54  ;;  %3119 = vmatprep.mubr.msk.f32.mxu1 %vm3280_vm1, %v3279_v2  ;;  %v24_v34 = vld [vmem:[%s3771_s0] sm:$0xff] }
 0x2d1   :  { %3127 = vmatprep.subr.mxu1 %v3279_v2 }
 0x2d2   :  { %v3238_v53 = vpop.eup %3237 }
 0x2d3   :  { %v1342_v35 = vmul.f32 %v3238_v53, %v3222_v5 }
 0x2d5   :  { %3115 = vmatmul.mubr.msk.f32.vlgmr.msra.gmra.mxu0 %vm667_vm2, %v1342_v35 }
 0x2d6   :  { %v3240_v36 = vpop.eup %3239  ;;  %3123 = vmatpush3.msra.mxu0 %v3547_v61  ;;  %3124 = vmatprep.mubr.msk.f32.mxu0 %vm3280_vm1, %v3279_v2 }
 0x2d7   :  { %v1343_v37 = vmul.f32 %v3240_v36, %v3224_v13  ;;  %3132 = vmatprep.subr.mxu0 %v3279_v2 }
 0x2d8   :  { %v1331_v38 = vpop.xlane.xlu1 %1330 }
 0x2d9   :  { %3245 = vrcp.f32 %v1331_v38  ;;  %v1328_v54 = vpop.xlane.xlu0 %1327  ;;  %3120 = vmatmul.mubr.msk.f32.vlgmr.msra.gmra.mxu1 %vm667_vm2, %v1343_v37 }
 0x2da   :  { %3247 = vrcp.f32 %v1328_v54  ;;  %3128 = vmatpush3.msra.mxu1 %v3549_v62  ;;  %3129 = vmatprep.mubr.msk.f32.mxu1 %vm3280_vm1, %v3279_v2 }
 0x2db   :  { %3137 = vmatprep.subr.mxu1 %v3279_v2 }
 0x2dc   :  { %v3242_v61 = vpop.eup %3241 }
 0x2dd   :  { %v3244_v39 = vpop.eup %3243  ;;  %v1345_v40 = vmul.f32 %v3242_v61, %v3226_v17 }
 0x2de   :  { %v1344_v41 = vmul.f32 %v3244_v39, %v3228_v18 }
 0x2df   :  { %3130 = vmatmul.mubr.msk.f32.vlgmr.msra.gmra.mxu1 %vm667_vm2, %v1345_v40 }
 0x2e0   :  { %3125 = vmatmul.mubr.msk.f32.vlgmr.msra.gmra.mxu0 %vm667_vm2, %v1344_v41  ;;  %3138 = vmatpush3.msra.mxu1 %v3573_v7  ;;  %v67_v7 = vld [vmem:[%s3775_s4 + $0x8] sm:$0xff] }
 0x2e1   :  { %3133 = vmatpush3.msra.mxu0 %v3571_v6  ;;  %3134 = vmatprep.mubr.msk.f32.mxu0 %vm3280_vm1, %v3279_v2  ;;  %v66_v6 = vld [vmem:[%s3775_s4] sm:$0xff] }
 0x2e2   :  { %3139 = vmatprep.mubr.msk.f32.mxu1 %vm3280_vm1, %v3279_v2  ;;  %3142 = vmatprep.subr.mxu0 %v3279_v2 }
 0x2e3   :  { %3147 = vmatprep.subr.mxu1 %v3279_v2 }
 0x2e6   :  { %v3246_v62 = vpop.eup %3245 }
 0x2e7   :  { %v3248_v42 = vpop.eup %3247  ;;  %v1347_v43 = vmul.f32 %v3246_v62, %v3230_v21 }
 0x2e8   :  { %v1346_v44 = vmul.f32 %v3248_v42, %v3232_v22 }
 0x2e9   :  { %3140 = vmatmul.mubr.msk.f32.vlgmr.msra.gmra.mxu1 %vm667_vm2, %v1347_v43 }
 0x2ea   :  { %3135 = vmatmul.mubr.msk.f32.vlgmr.msra.gmra.mxu0 %vm667_vm2, %v1346_v44  ;;  %3149 = vmatprep.mubr.msk.f32.mxu1 %vm3280_vm1, %v3279_v2 }
 0x2eb   :  { %3144 = vmatprep.mubr.msk.f32.mxu0 %vm3280_vm1, %v3279_v2  ;;  %3143 = vmatpush3.msra.mxu0 %v66_v6 }
 0x2ec   :  { %3152 = vmatprep.subr.mxu0 %v3279_v2  ;;  %3148 = vmatpush3.msra.mxu1 %v67_v7  ;;  %v2575_v7 = vld [vmem:[%s3776_s5 + $0x18] sm:$0xff] }
 0x2ed   :  { %3157 = vmatprep.subr.mxu1 %v3279_v2 }
 0x38b   :  { %v1417_v46 = vpop.f32.mrf.mxu0 }
 0x38c   :  { %3145 = vmatmul.mubr.msk.f32.vlgmr.msra.gmra.mxu0 %vm667_vm2, %v1417_v46  ;;  %v2573_v46 = vld [vmem:[%s3776_s5 + $0x8] sm:$0xff] }
 0x38d   :  { %v3106_v47 = vpop.f32.mrf.mxu0  ;;  %3153 = vmatpush3.msra.mxu0 %v68_v45  ;;  %3154 = vmatprep.mubr.msk.f32.mxu0 %vm3280_vm1, %v3279_v2  ;;  %v2574_v45 = vld [vmem:[%s3776_s5 + $0x10] sm:$0xff] }
 0x38e   :  { %3162 = vmatprep.subr.mxu0 %v3279_v2  ;;  %v2572_v47 = vld [vmem:[%s3776_s5] sm:$0xff] }
 0x38f   :  { %v1490_v49 = vpop.f32.mrf.mxu1 }
 0x390   :  { %3150 = vmatmul.mubr.msk.f32.vlgmr.msra.gmra.mxu1 %vm667_vm2, %v1490_v49  ;;  %v2582_v49 = vld [vmem:[%s3776_s5 + $0x50] sm:$0xff] }
 0x391   :  { %v3111_v50 = vpop.f32.mrf.mxu1  ;;  %3158 = vmatpush3.msra.mxu1 %v69_v48  ;;  %3159 = vmatprep.mubr.msk.f32.mxu1 %vm3280_vm1, %v3279_v2  ;;  %v2583_v48 = vld [vmem:[%s3776_s5 + $0x58] sm:$0xff] }
 0x392   :  { %3167 = vmatprep.subr.mxu1 %v3279_v2  ;;  %v2581_v50 = vld [vmem:[%s3776_s5 + $0x48] sm:$0xff] }
 0x395   :  { %v1563_v52 = vpop.f32.mrf.mxu0 }
 0x396   :  { %3155 = vmatmul.mubr.msk.f32.vlgmr.msra.gmra.mxu0 %vm667_vm2, %v1563_v52 }
 0x397   :  { %v3116_v55 = vpop.f32.mrf.mxu0  ;;  %3163 = vmatpush3.msra.mxu0 %v70_v51  ;;  %3164 = vmatprep.mubr.msk.f32.mxu0 %vm3280_vm1, %v3279_v2  ;;  %v2580_v51 = vld [vmem:[%s3776_s5 + $0x40] sm:$0xff] }
 0x398   :  { %3172 = vmatprep.subr.mxu0 %v3279_v2 }
 0x399   :  { %v1636_v57 = vpop.f32.mrf.mxu1 }
 0x39a   :  { %3160 = vmatmul.mubr.msk.f32.vlgmr.msra.gmra.mxu1 %vm667_vm2, %v1636_v57 }
 0x39b   :  { %v3121_v58 = vpop.f32.mrf.mxu1  ;;  %3168 = vmatpush3.msra.mxu1 %v71_v56  ;;  %3169 = vmatprep.mubr.msk.f32.mxu1 %vm3280_vm1, %v3279_v2 }
 0x39c   :  { %3177 = vmatprep.subr.mxu1 %v3279_v2 }
 0x39f   :  { %v1782_v60 = vpop.f32.mrf.mxu1 }
 0x3a0   :  { %v1709_v0 = vpop.f32.mrf.mxu0  ;;  %3170 = vmatmul.mubr.msk.f32.vlgmr.msra.gmra.mxu1 %vm667_vm2, %v1782_v60 }
 0x3a1   :  { %3165 = vmatmul.mubr.msk.f32.vlgmr.msra.gmra.mxu0 %vm667_vm2, %v1709_v0  ;;  %v3131_v1 = vpop.f32.mrf.mxu1  ;;  %3178 = vmatpush3.msra.mxu1 %v73_v59 }
 0x3a2   :  { %v3126_v3 = vpop.f32.mrf.mxu0  ;;  %3173 = vmatpush3.msra.mxu0 %v72_v63  ;;  %3174 = vmatprep.mubr.msk.f32.mxu0 %vm3280_vm1, %v3279_v2  ;;  %v2860_v63 = vld [vmem:[%s3776_s5 + $0x61] ss:$0 sm:$0xff] }
 0x3a3   :  { %3179 = vmatprep.mubr.msk.f32.mxu1 %vm3280_vm1, %v3279_v2  ;;  %3182 = vmatprep.subr.mxu0 %v2575_v7  ;;  %v2861_v3 = vld [vmem:[%s3776_s5 + $0x62] ss:$0 sm:$0xff] }
 0x3a4   :  { %3193 = vmatprep.subr.mxu1 %v2583_v48 }
 0x3a9   :  { %v1928_v4 = vpop.f32.mrf.mxu1 }
 0x3aa   :  { %v1855_v5 = vpop.f32.mrf.mxu0  ;;  %3180 = vmatmul.mubr.msk.f32.vlgmr.msra.gmra.mxu1 %vm667_vm2, %v1928_v4 }
 0x3ab   :  { %3175 = vmatmul.mubr.msk.f32.vlgmr.msra.gmra.mxu0 %vm667_vm2, %v1855_v5  ;;  %v3141_v8 = vpop.f32.mrf.mxu1  ;;  %3194 = vmatpush3.msra.mxu1 %v2583_v48 }
 0x3ac   :  { %v3136_v9 = vpop.f32.mrf.mxu0  ;;  %3183 = vmatpush3.msra.mxu0 %v2575_v7  ;;  %3195 = vmatprep.subr.mxu1 %v2582_v49  ;;  %v2869_v7 = vld [vmem:[%s3776_s5 + $0x66] ss:$0 sm:$0xff] }
 0x3ad   :  { %3184 = vmatprep.subr.mxu0 %v2574_v45  ;;  %3196 = vmatpush3.msra.mxu1 %v2582_v49 }
 0x3ae   :  { %3185 = vmatpush3.msra.mxu0 %v2574_v45  ;;  %3197 = vmatprep.subr.mxu1 %v2581_v50 }
 0x3af   :  { %3186 = vmatprep.subr.mxu0 %v2573_v46  ;;  %3198 = vmatpush3.msra.mxu1 %v2581_v50 }
 0x3b0   :  { %3187 = vmatpush3.msra.mxu0 %v2573_v46  ;;  %3199 = vmatprep.subr.mxu1 %v2580_v51 }
 0x3b1   :  { %3188 = vmatprep.subr.mxu0 %v2572_v47  ;;  %3200 = vmatpush3.msra.mxu1 %v2580_v51 }
 0x3b2   :  { %3189 = vmatpush3.msra.mxu0 %v2572_v47 }
 0x44c   :  { %v2001_v10 = vpop.f32.mrf.mxu0 }
 0x44e   :  { %v3146_v11 = vpop.f32.mrf.mxu0 }
 0x44f   :  { %v2579_v11 = vld [vmem:[%s3776_s5 + $0x38] sm:$0xff] }
 0x450   :  { %v2074_v12 = vpop.f32.mrf.mxu1  ;;  %3201 = vmatprep.subr.mxu1 %v2579_v11 }
 0x451   :  { %3202 = vmatpush3.msra.mxu1 %v2579_v11 }
 0x452   :  { %v3151_v13 = vpop.f32.mrf.mxu1 }
 0x453   :  { %v2577_v13 = vld [vmem:[%s3776_s5 + $0x28] sm:$0xff] }
 0x456   :  { %v2147_v14 = vpop.f32.mrf.mxu0 }
 0x457   :  { %v2516_v22 = vadd.f32 %v2147_v14, %v2001_v10  ;;  %v2576_v14 = vld [vmem:[%s3776_s5 + $0x20] sm:$0xff] }
 0x458   :  { %v3156_v15 = vpop.f32.mrf.mxu0 }
 0x459   :  { %v2862_v15 = vld [vmem:[%s3776_s5 + $0x63] ss:$0 sm:$0xff] }
 0x45a   :  { %v2220_v16 = vpop.f32.mrf.mxu1 }
 0x45b   :  { %v2517_v21 = vadd.f32 %v2220_v16, %v2074_v12  ;;  %v2578_v12 = vld [vmem:[%s3776_s5 + $0x30] sm:$0xff] }
 0x45c   :  { %v3161_v17 = vpop.f32.mrf.mxu1  ;;  %3203 = vmatprep.subr.mxu1 %v2578_v12 }
 0x45d   :  { %3204 = vmatpush3.msra.mxu1 %v2578_v12 }
 0x45e   :  { %3205 = vmatprep.subr.mxu1 %v2577_v13 }
 0x45f   :  { %3206 = vmatpush3.msra.mxu1 %v2577_v13 }
 0x460   :  { %v2366_v18 = vpop.f32.mrf.mxu1  ;;  %3207 = vmatprep.subr.mxu1 %v2576_v14 }
 0x461   :  { %v2293_v19 = vpop.f32.mrf.mxu0  ;;  %v2519_v23 = vadd.f32 %v2517_v21, %v2366_v18  ;;  %3208 = vmatpush3.msra.mxu1 %v2576_v14  ;;  %v2865_v21 = vld [vmem:[%s3776_s5 + $0x64] ss:$0 sm:$0xff] }
 0x462   :  { %v3171_v20 = vpop.f32.mrf.mxu1  ;;  %v2518_v24 = vadd.f32 %v2516_v22, %v2293_v19 }
 0x463   :  { %v3166_v2 = vpop.f32.mrf.mxu0 }
 0x46a   :  { %v2512_v26 = vpop.f32.mrf.mxu1 }
 0x46b   :  { %v2439_v27 = vpop.f32.mrf.mxu0  ;;  %v2521_v28 = vadd.f32 %v2519_v23, %v2512_v26 }
 0x46c   :  { %v2520_v29 = vadd.f32 %v2518_v24, %v2439_v27  ;;  %v3181_v30 = vpop.f32.mrf.mxu1 }
 0x46d   :  { %v2528_v32 = vadd.f32 %v2859_v25, %v2521_v28  ;;  %v3176_v33 = vpop.f32.mrf.mxu0 }
 0x46e   :  { %v2527_v53 = vadd.f32 %v2859_v25, %v2520_v29 }
 0x46f   :  { %v2530_v35 = vadd.f32 %v2528_v32, %v25_v31 }
 0x470   :  { %v2529_v36 = vadd.f32 %v2527_v53, %v24_v34 }
 0x471   :  { %v2536_v37 = vsel %vm82_vm0, %v2530_v35, 0.0 }
 0x472   :  { %2537 = vadd.xlane.f32.xlu1 %v2536_v37  ;;  %v2533_v38 = vsel %vm82_vm0, %v2529_v36, 0.0 }
 0x473   :  { %2534 = vadd.xlane.f32.xlu0 %v2533_v38 }
 0x4fb   :  { %v2538_v54 = vpop.xlane.xlu1 %2537 }
 0x4fc   :  { %v2541_v61 = vmul.f32 0.03125, %v2538_v54  ;;  %v2535_v39 = vpop.xlane.xlu0 %2534 }
 0x4fd   :  { %v2540_v40 = vmul.f32 0.03125, %v2535_v39 }
 0x4fe   :  { %v2543_v41 = vsub.f32 %v2530_v35, %v2541_v61 }
 0x4ff   :  { %v2542_v62 = vsub.f32 %v2529_v36, %v2540_v40 }
 0x500   :  { %v2545_v42 = vmul.f32 %v2543_v41, %v2543_v41 }
 0x501   :  { %v2544_v43 = vmul.f32 %v2542_v62, %v2542_v62 }
 0x502   :  { %v2549_v44 = vsel %vm82_vm0, %v2545_v42, 0.0 }
 0x503   :  { %2550 = vadd.xlane.f32.xlu1 %v2549_v44  ;;  %v2546_v6 = vsel %vm82_vm0, %v2544_v43, 0.0  ;;  %v2868_v43 = vld [vmem:[%s3776_s5 + $0x65] ss:$0 sm:$0xff] }
 0x504   :  { %2547 = vadd.xlane.f32.xlu0 %v2546_v6 }
 0x58c   :  { %v2551_v52 = vpop.xlane.xlu1 %2550 }
 0x58d   :  { %v2553_v55 = vmul.f32 0.03125, %v2551_v52  ;;  %v2548_v56 = vpop.xlane.xlu0 %2547 }
 0x58e   :  { %v2552_v57 = vmul.f32 0.03125, %v2548_v56 }
 0x58f   :  { %v2555_v58 = vadd.f32 1e-12, %v2553_v55 }
 0x590   :  { %v2554_v59 = vadd.f32 1e-12, %v2552_v57 }
 0x591   :  { %3249 = vrsqrt.f32 %v2555_v58 }
 0x592   :  { %3251 = vrsqrt.f32 %v2554_v59 }
 0x59e   :  { %v3250_v60 = vpop.eup %3249 }
 0x59f   :  { %v3252_v0 = vpop.eup %3251  ;;  %v2559_v1 = vmul.f32 %v3250_v60, %v2543_v41 }
 0x5a0   :  { %v2558_v4 = vmul.f32 %v3252_v0, %v2542_v62 }
 0x5a1   :  { %v2565_v5 = vmul.f32 %v2860_v63, %v2559_v1 }
 0x5a2   :  { %v2564_v8 = vmul.f32 %v2860_v63, %v2558_v4 }
 0x5a3   :  { %v2571_v9 = vadd.f32 %v2861_v3, %v2565_v5 }
 0x5a4   :  { %v2570_v10 = vadd.f32 %v2861_v3, %v2564_v8 }
 0x5a6   :  { %3190 = vmatprep.mubr.msk.f32.mxu0 %vm82_vm0, %v2570_v10 }
 0x5a7   :  { %3191 = vmatmul.mubr.msk.f32.vlgmr.msra.gmra.mxu0 %vm82_vm0, %v2571_v9 }
 0x667   :  { %v3192_v16 = vpop.f32.mrf.mxu0 }
 0x668   :  { %v2668_v17 = vadd.f32 %v3192_v16, %v2862_v15 }
 0x669   :  { %v2662_v18 = vpop.f32.mrf.mxu0 }
 0x66a   :  { %v2663_v19 = vadd.f32 %v2862_v15, %v2662_v18  ;;  %v2672_v2 = vmax.f32 %v2668_v17, 0.0 }
 0x66c   :  { %v2671_v20 = vmax.f32 %v2663_v19, 0.0 }
 0x66e   :  { %3209 = vmatprep.mubr.msk.f32.mxu1 %vm2677_vm3, %v2671_v20 }
 0x66f   :  { %3210 = vmatmul.mubr.msk.f32.vlgmr.msra.gmra.mxu1 %vm2677_vm3, %v2672_v2 }
 0x72f   :  { %v3211_v22 = vpop.f32.mrf.mxu1 }
 0x730   :  { %v2756_v23 = vadd.f32 %v3211_v22, %v2865_v21 }
 0x731   :  { %v2750_v24 = vpop.f32.mrf.mxu1 }
 0x732   :  { %v2751_v25 = vadd.f32 %v2865_v21, %v2750_v24  ;;  %v2760_v26 = vadd.f32 %v2756_v23, %v2571_v9 }
 0x734   :  { %v2766_v27 = vsel %vm82_vm0, %v2760_v26, 0.0  ;;  %v2759_v28 = vadd.f32 %v2751_v25, %v2570_v10 }
 0x735   :  { %2767 = vadd.xlane.f32.xlu1 %v2766_v27 }
 0x736   :  { %v2763_v29 = vsel %vm82_vm0, %v2759_v28, 0.0 }
 0x737   :  { %2764 = vadd.xlane.f32.xlu0 %v2763_v29 }
 0x7be   :  { %v2768_v30 = vpop.xlane.xlu1 %2767 }
 0x7bf   :  { %v2770_v31 = vmul.f32 0.03125, %v2768_v30 }
 0x7c0   :  { %v2765_v32 = vpop.xlane.xlu0 %2764 }
 0x7c1   :  { %v2772_v33 = vsub.f32 %v2760_v26, %v2770_v31  ;;  %v2769_v34 = vmul.f32 0.03125, %v2765_v32 }
 0x7c3   :  { %v2771_v53 = vsub.f32 %v2759_v28, %v2769_v34  ;;  %v2774_v35 = vmul.f32 %v2772_v33, %v2772_v33 }
 0x7c5   :  { %v2778_v36 = vsel %vm82_vm0, %v2774_v35, 0.0  ;;  %v2773_v37 = vmul.f32 %v2771_v53, %v2771_v53 }
 0x7c6   :  { %2779 = vadd.xlane.f32.xlu1 %v2778_v36 }
 0x7c7   :  { %v2775_v38 = vsel %vm82_vm0, %v2773_v37, 0.0 }
 0x7c8   :  { %2776 = vadd.xlane.f32.xlu0 %v2775_v38 }
 0x84f   :  { %v2780_v54 = vpop.xlane.xlu1 %2779 }
 0x850   :  { %v2782_v61 = vmul.f32 0.03125, %v2780_v54 }
 0x851   :  { %v2777_v39 = vpop.xlane.xlu0 %2776 }
 0x852   :  { %v2784_v40 = vadd.f32 1e-12, %v2782_v61  ;;  %v2781_v41 = vmul.f32 0.03125, %v2777_v39 }
 0x854   :  { %3253 = vrsqrt.f32 %v2784_v40  ;;  %v2783_v62 = vadd.f32 1e-12, %v2781_v41 }
 0x856   :  { %3255 = vrsqrt.f32 %v2783_v62 }
 0x861   :  { %v3254_v42 = vpop.eup %3253 }
 0x862   :  { %v2788_v44 = vmul.f32 %v3254_v42, %v2772_v33 }
 0x863   :  { %v3256_v6 = vpop.eup %3255 }
 0x864   :  { %v2787_v45 = vmul.f32 %v3256_v6, %v2771_v53  ;;  %v2794_v46 = vmul.f32 %v2868_v43, %v2788_v44 }
 0x866   :  { %v2793_v47 = vmul.f32 %v2868_v43, %v2787_v45  ;;  %v2800_v48 = vadd.f32 %v2869_v7, %v2794_v46 }
 0x868   :  { %v2799_v49 = vadd.f32 %v2869_v7, %v2793_v47  ;;  %2802 = vst.msk [vmem:[#allocation2 + $0x8] sm:$0xff] %vm82_vm0, %v2800_v48 }
 0x86a   :  { %2801 = vst.msk [vmem:[#allocation2] sm:$0xff] %vm82_vm0, %v2799_v49 }
 0x86b   :  { %3268 = shalt.err (!%p3265_p4)
}
 0x86c   :  { %s3282_s5 = smov 128   ;;  %s3283_s21 = smov 8  }
 0x86d   :  { %2814 = dma.vmem_to_hbm [thread:$0]  %s2809_s19, 256, %s3777_s6, [#allocation3], %s3282_s5, %s3282_s5, %s3283_s21  }
 0x86e   :  { %3277 = dma.done.wait [#allocation3], 256  }
 0x86f   :  { %3278 = vsyncadd [#allocation3], 4294967040 }
 0x870   :  { %2818 = vsyncpa [#allocation3], 1 }

</bundles_post_ra>
